<compile_context>
chip_gen: v5e
topology: v5e:2x2
jax: 0.10.0
libtpu: 0.0.40
codegen_flags: <defaults>
</compile_context>

<pallas_src>
import jax
import jax.numpy as jnp
from jax.experimental import pallas as pl
from jax.experimental.pallas import tpu as pltpu


def _round_up(x, m):
    return (x + m - 1) // m * m


# ---------------------------------------------------------------------------
# Kernel 1: one big-K MXU matmul per row tile + per-tile BatchNorm partials.
#   (TM, K_pad) bf16 @ (K_pad, C_pad) bf16 -> f32 accumulator; y stored bf16,
#   partial sum / sum-of-squares taken from the exact f32 accumulator.
# ---------------------------------------------------------------------------
def _conv_matmul_kernel(cols_ref, w_ref, y_ref, psum_ref, pssq_ref):
    acc = jnp.dot(cols_ref[...], w_ref[...], preferred_element_type=jnp.float32)
    y_ref[...] = acc.astype(y_ref.dtype)
    # Per-tile partial statistics, reduced outside the kernel (keeps the grid
    # "parallel": no cross-step carry, no race).
    # TODO(synk): for very large M use a per-tile shifted sum (Welford-style
    # combine) instead of E[x^2]-mean^2 to avoid cancellation at scale.
    psum_ref[...] = jnp.sum(acc, axis=0, keepdims=True).reshape(psum_ref.shape)
    pssq_ref[...] = jnp.sum(acc * acc, axis=0, keepdims=True).reshape(pssq_ref.shape)


# ---------------------------------------------------------------------------
# Kernel 2: fused per-channel affine (BatchNorm) + ReLU, lane-dense tiles,
# bf16 in / bf16 out, output aliased in place over y.
# ---------------------------------------------------------------------------
def _bn_relu_kernel(y_ref, scale_ref, shift_ref, o_ref):
    y = y_ref[...].astype(jnp.float32)
    o_ref[...] = jnp.maximum(y * scale_ref[...] + shift_ref[...], 0.0).astype(o_ref.dtype)


def conv_down_forward(x_ncdhw, params, eps=1e-5,
                      compute_dtype=jnp.bfloat16, row_tile=512):
    """Conv3d(3x3x3, stride 2, pad 1) -> BatchNorm3d (batch stats) -> ReLU."""
    w = params["weight"]                              # (Cout, Cin, 3, 3, 3)
    gamma, beta = params["gamma"], params["beta"]     # (Cout,), (Cout,)
    # params["bias"] is intentionally unused: cancelled exactly by training-mode
    # BatchNorm (mean shifts by b, normalization subtracts it, variance unchanged).

    N, Cin, D, H, W = x_ncdhw.shape
    Cout = w.shape[0]
    assert D % 2 == 0 and H % 2 == 0 and W % 2 == 0, "even spatial dims expected"
    Do, Ho, Wo = D // 2, H // 2, W // 2
    M = N * Do * Ho * Wo                    # number of output spatial positions
    K = 27 * Cin                            # im2col contraction depth

    K_pad = _round_up(K, 128)               # lane-dense LHS / sublane-aligned RHS
    # NOTE: production Cout is assumed >= 128; for tiny Cout (toy shapes) the
    # pad to 128 lanes wastes MXU columns / y bytes but keeps stores unmasked.
    # TODO(synk): for compute-bound shapes on v6e/v7x, tile Cout in 256-wide
    # blocks (second "parallel" grid axis) to fill the 2x256x256 MXU.
    C_pad = _round_up(Cout, 128)

    row_tile = _round_up(row_tile, 8)
    TM = min(row_tile, _round_up(M, 8))     # row tile (multiple of 8 sublanes)
    # Keep >= 2 row tiles so the "parallel" grid axis shards across v7x's 2 TCs.
    if M > 8 and _round_up(M, TM) // TM < 2:
        TM = _round_up((M + 1) // 2, 8)
    M_pad = _round_up(M, TM)
    n_tiles = M_pad // TM

    # ---- wrapper-side layout plumbing: cast to bf16 FIRST, NCDHW -> NDHWC,
    # zero halo pad, stride-2 im2col, single padded bf16 slab. ------------------
    # TODO(synk): at production scale (large Cin / D), assemble the im2col tile
    # in-kernel via halo DMA (memory_space=pl.ANY) + depth tiling instead of
    # materializing the 27x slab in HBM.
    x = jnp.transpose(x_ncdhw.astype(compute_dtype), (0, 2, 3, 4, 1))  # NDHWC bf16
    xp = jnp.pad(x, ((0, 0), (1, 1), (1, 1), (1, 1), (0, 0)))          # (N,D+2,H+2,W+2,Cin)
    taps = []
    for kd in range(3):
        for kh in range(3):
            for kw in range(3):
                taps.append(xp[:, kd:kd + 2 * Do:2,
                               kh:kh + 2 * Ho:2,
                               kw:kw + 2 * Wo:2, :])                   # (N,Do,Ho,Wo,Cin)
    cols = jnp.stack(taps, axis=4).reshape(M, K)                       # tap-major, Cin-minor
    cols = jnp.pad(cols, ((0, M_pad - M), (0, K_pad - K)))             # already bf16

    w_k = jnp.transpose(w.astype(compute_dtype), (2, 3, 4, 1, 0)).reshape(K, Cout)
    w_k = jnp.pad(w_k, ((0, K_pad - K), (0, C_pad - Cout)))

    # ---- Pallas kernel 1: conv as one im2col matmul + partial BN stats --------
    bytes_cd = jnp.dtype(compute_dtype).itemsize
    cost1 = pl.CostEstimate(
        flops=2 * M_pad * K_pad * C_pad,
        transcendentals=0,
        bytes_accessed=(M_pad * K_pad * bytes_cd          # cols read
                        + K_pad * C_pad * bytes_cd        # resident weight
                        + M_pad * C_pad * bytes_cd        # y write (bf16)
                        + 2 * n_tiles * C_pad * 4))       # partial stats

    y, psum, pssq = pl.pallas_call(
        _conv_matmul_kernel,
        grid=(n_tiles,),
        in_specs=[
            pl.BlockSpec((TM, K_pad), lambda i: (i, 0)),
            # Resident weight (constant index map).
            # TODO(synk): on v7x with large Cin/Cout, single-buffer this operand
            # (pipeline_mode=pl.Buffered(1)) and set vmem_limit_bytes to stay
            # within the 64 MiB VMEM budget.
            pl.BlockSpec((K_pad, C_pad), lambda i: (0, 0)),
        ],
        out_specs=(
            pl.BlockSpec((TM, C_pad), lambda i: (i, 0)),
            pl.BlockSpec((1, 1, C_pad), lambda i: (i, 0, 0)),
            pl.BlockSpec((1, 1, C_pad), lambda i: (i, 0, 0)),
        ),
        out_shape=(
            jax.ShapeDtypeStruct((M_pad, C_pad), compute_dtype),       # y in bf16
            jax.ShapeDtypeStruct((n_tiles, 1, C_pad), jnp.float32),
            jax.ShapeDtypeStruct((n_tiles, 1, C_pad), jnp.float32),
        ),
        compiler_params=pltpu.CompilerParams(
            dimension_semantics=("parallel",)),
        cost_estimate=cost1,
    )(cols, w_k)

    # ---- finalize BatchNorm statistics (tiny per-channel scalar math) ---------
    count = jnp.float32(M)                      # padded rows contribute exact zeros
    mean = jnp.sum(psum[:, 0, :], axis=0, keepdims=True) / count          # (1, C_pad)
    var = jnp.sum(pssq[:, 0, :], axis=0, keepdims=True) / count - mean * mean
    var = jnp.maximum(var, 0.0)
    gamma_p = jnp.pad(gamma.astype(jnp.float32), (0, C_pad - Cout)).reshape(1, C_pad)
    beta_p = jnp.pad(beta.astype(jnp.float32), (0, C_pad - Cout)).reshape(1, C_pad)
    scale = gamma_p * jax.lax.rsqrt(var + eps)
    shift = beta_p - mean * scale

    # ---- Pallas kernel 2: lane-dense fused affine + ReLU (in-place over y) ----
    TM2 = TM
    for cand in (2048, 1024):                   # bigger tile for the mem-bound pass
        if cand > TM and M_pad % cand == 0 and M_pad // cand >= 2:
            TM2 = cand
            break
    n_tiles2 = M_pad // TM2

    out = pl.pallas_call(
        _bn_relu_kernel,
        grid=(n_tiles2,),
        in_specs=[
            pl.BlockSpec((TM2, C_pad), lambda i: (i, 0)),
            pl.BlockSpec((1, C_pad), lambda i: (0, 0)),
            pl.BlockSpec((1, C_pad), lambda i: (0, 0)),
        ],
        out_specs=pl.BlockSpec((TM2, C_pad), lambda i: (i, 0)),
        out_shape=jax.ShapeDtypeStruct((M_pad, C_pad), compute_dtype),
        input_output_aliases={0: 0},            # reuse y's buffer in place
        compiler_params=pltpu.CompilerParams(
            dimension_semantics=("parallel",)),
    )(y, scale, shift)

    # ---- wrapper-side layout plumbing: strip padding, back to NCDHW, f32 ------
    out = out[:M, :Cout].astype(jnp.float32).reshape(N, Do, Ho, Wo, Cout)
    return jnp.transpose(out, (0, 4, 1, 2, 3))


def reference_forward(x, w, b, gamma, beta, eps=1e-5, compute_dtype=jnp.bfloat16):
    """Pure-JAX reference of the PyTorch forward (NCDHW).

    Inputs are cast to the kernel's compute dtype (bf16 products are exact in
    f32); the conv bias is KEPT here to verify that dropping it in the kernel is
    exact under training-mode BatchNorm.  The kernel additionally stores its
    conv output / final output in bf16, hence the ~1e-2 comparison tolerance.
    """
    xc = x.astype(compute_dtype).astype(jnp.float32)
    wc = w.astype(compute_dtype).astype(jnp.float32)
    y = jax.lax.conv_general_dilated(
        xc, wc, window_strides=(2, 2, 2),
        padding=((1, 1), (1, 1), (1, 1)),
        dimension_numbers=("NCDHW", "OIDHW", "NCDHW"),
        precision=jax.lax.Precision.HIGHEST)
    y = y + b.reshape(1, -1, 1, 1, 1)
    mean = jnp.mean(y, axis=(0, 2, 3, 4), keepdims=True)
    var = jnp.mean((y - mean) ** 2, axis=(0, 2, 3, 4), keepdims=True)
    yn = (y - mean) / jnp.sqrt(var + eps)
    yn = yn * gamma.reshape(1, -1, 1, 1, 1) + beta.reshape(1, -1, 1, 1, 1)
    return jnp.maximum(yn, 0.0)


if __name__ == "__main__":
    key = jax.random.PRNGKey(0)
    k1, k2, k3, k4, k5 = jax.random.split(key, 5)

    N, Cin, Cout = 2, 4, 8
    D = H = W = 16

    x = jax.random.normal(k1, (N, Cin, D, H, W), jnp.float32)
    weight = 0.1 * jax.random.normal(k2, (Cout, Cin, 3, 3, 3), jnp.float32)
    bias = 0.1 * jax.random.normal(k3, (Cout,), jnp.float32)
    gamma = 1.0 + 0.1 * jax.random.normal(k4, (Cout,), jnp.float32)
    beta = 0.1 * jax.random.normal(k5, (Cout,), jnp.float32)

    params = dict(weight=weight, bias=bias, gamma=gamma, beta=beta)

    fwd = jax.jit(conv_down_forward)
    out = jax.block_until_ready(fwd(x, params))
    assert out.shape == (N, Cout, D // 2, H // 2, W // 2), out.shape

    ref = reference_forward(x, weight, bias, gamma, beta)
    max_err = float(jnp.max(jnp.abs(out - ref)))
    if not bool(jnp.allclose(out, ref, atol=2e-2, rtol=2e-2)):
        raise AssertionError(f"Pallas result mismatch vs reference, max_err={max_err}")

    print("KERNEL_OK")
</pallas_src>

<mosaic_0001>
module attributes {stable_mosaic.version = 11 : i64} {
  func.func @_conv_matmul_kernel(%arg0: i32, %arg1: memref<512x128xbf16, #tpu.memory_space<vmem>>, %arg2: memref<128x128xbf16, #tpu.memory_space<vmem>>, %arg3: memref<512x128xbf16, #tpu.memory_space<vmem>>, %arg4: memref<1x1x128xf32, #tpu.memory_space<vmem>>, %arg5: memref<1x1x128xf32, #tpu.memory_space<vmem>>) attributes {dimension_semantics = [#tpu.dimension_semantics<parallel>], iteration_bounds = array<i64: 2>, scalar_prefetch = 0 : i64, scratch_operands = 0 : i64, tpu.core_type = #tpu.core_type<tc>, window_params = [{transform_indices = @transform_0, window_bounds = array<i64: 512, 128>}, {pipeline_mode = #tpu.pipeline_mode<synchronous>, transform_indices = @transform_1, window_bounds = array<i64: 128, 128>}, {transform_indices = @transform_2, window_bounds = array<i64: 512, 128>}, {transform_indices = @transform_3, window_bounds = array<i64: 1, 1, 128>}, {transform_indices = @transform_4, window_bounds = array<i64: 1, 1, 128>}]} {
    %c0 = arith.constant 0 : index
    %c0_0 = arith.constant 0 : index
    %0 = vector.load %arg1[%c0, %c0_0] : memref<512x128xbf16, #tpu.memory_space<vmem>>, vector<512x128xbf16>
    %c0_1 = arith.constant 0 : index
    %c0_2 = arith.constant 0 : index
    %1 = vector.load %arg2[%c0_1, %c0_2] : memref<128x128xbf16, #tpu.memory_space<vmem>>, vector<128x128xbf16>
    %cst = arith.constant dense<0.000000e+00> : vector<512x128xf32>
    %2 = tpu.matmul %0, %1, %cst {dimension_numbers = #tpu.dot_dimension_numbers<[1], [0], [0], [1], [0, 0, 1, 1], [], []>} : vector<512x128xbf16>, vector<128x128xbf16>, vector<512x128xf32> -> vector<512x128xf32>
    %3 = arith.truncf %2 : vector<512x128xf32> to vector<512x128xbf16>
    %c0_3 = arith.constant 0 : index
    %c0_4 = arith.constant 0 : index
    %4 = vector.load %arg3[%c0_3, %c0_4] : memref<512x128xbf16, #tpu.memory_space<vmem>>, vector<512x128xbf16>
    tpu.vector_store %arg3[%c0_3, %c0_4], %3 {strides = array<i32>} : memref<512x128xbf16, #tpu.memory_space<vmem>>, vector<512x128xbf16>,
    %cst_5 = arith.constant dense<0.000000e+00> : vector<128xf32>
    %5 = vector.multi_reduction <add>, %2, %cst_5 [0] : vector<512x128xf32> to vector<128xf32>
    %6 = vector.shape_cast %5 : vector<128xf32> to vector<1x128xf32>
    %7 = vector.shape_cast %6 : vector<1x128xf32> to vector<1x1x128xf32>
    %c0_6 = arith.constant 0 : index
    %c0_7 = arith.constant 0 : index
    %c0_8 = arith.constant 0 : index
    %8 = vector.load %arg4[%c0_6, %c0_7, %c0_8] : memref<1x1x128xf32, #tpu.memory_space<vmem>>, vector<1x1x128xf32>
    tpu.vector_store %arg4[%c0_6, %c0_7, %c0_8], %7 {strides = array<i32>} : memref<1x1x128xf32, #tpu.memory_space<vmem>>, vector<1x1x128xf32>,
    %9 = arith.mulf %2, %2 : vector<512x128xf32>
    %cst_9 = arith.constant dense<0.000000e+00> : vector<128xf32>
    %10 = vector.multi_reduction <add>, %9, %cst_9 [0] : vector<512x128xf32> to vector<128xf32>
    %11 = vector.shape_cast %10 : vector<128xf32> to vector<1x128xf32>
    %12 = vector.shape_cast %11 : vector<1x128xf32> to vector<1x1x128xf32>
    %c0_10 = arith.constant 0 : index
    %c0_11 = arith.constant 0 : index
    %c0_12 = arith.constant 0 : index
    %13 = vector.load %arg5[%c0_10, %c0_11, %c0_12] : memref<1x1x128xf32, #tpu.memory_space<vmem>>, vector<1x1x128xf32>
    tpu.vector_store %arg5[%c0_10, %c0_11, %c0_12], %12 {strides = array<i32>} : memref<1x1x128xf32, #tpu.memory_space<vmem>>, vector<1x1x128xf32>,
    return
  }
  func.func @transform_0(%arg0: i32) -> (i32, i32) {
    %c0_i32 = arith.constant 0 : i32
    %c0_i32_0 = arith.constant 0 : i32
    return %arg0, %c0_i32 : i32, i32
  }
  func.func @transform_1(%arg0: i32) -> (i32, i32) {
    %c0_i32 = arith.constant 0 : i32
    %c0_i32_0 = arith.constant 0 : i32
    %c0_i32_1 = arith.constant 0 : i32
    return %c0_i32, %c0_i32_0 : i32, i32
  }
  func.func @transform_2(%arg0: i32) -> (i32, i32) {
    %c0_i32 = arith.constant 0 : i32
    %c0_i32_0 = arith.constant 0 : i32
    return %arg0, %c0_i32 : i32, i32
  }
  func.func @transform_3(%arg0: i32) -> (i32, i32, i32) {
    %c0_i32 = arith.constant 0 : i32
    %c0_i32_0 = arith.constant 0 : i32
    %c0_i32_1 = arith.constant 0 : i32
    return %arg0, %c0_i32, %c0_i32_0 : i32, i32, i32
  }
  func.func @transform_4(%arg0: i32) -> (i32, i32, i32) {
    %c0_i32 = arith.constant 0 : i32
    %c0_i32_0 = arith.constant 0 : i32
    %c0_i32_1 = arith.constant 0 : i32
    return %arg0, %c0_i32, %c0_i32_0 : i32, i32, i32
  }
}

module attributes {stable_mosaic.version = 11 : i64} {
  func.func @_bn_relu_kernel(%arg0: i32, %arg1: memref<512x128xbf16, #tpu.memory_space<vmem>>, %arg2: memref<1x128xf32, #tpu.memory_space<vmem>>, %arg3: memref<1x128xf32, #tpu.memory_space<vmem>>, %arg4: memref<512x128xbf16, #tpu.memory_space<vmem>>) attributes {dimension_semantics = [#tpu.dimension_semantics<parallel>], iteration_bounds = array<i64: 2>, scalar_prefetch = 0 : i64, scratch_operands = 0 : i64, tpu.core_type = #tpu.core_type<tc>, window_params = [{transform_indices = @transform_0, window_bounds = array<i64: 512, 128>}, {pipeline_mode = #tpu.pipeline_mode<synchronous>, transform_indices = @transform_1, window_bounds = array<i64: 1, 128>}, {pipeline_mode = #tpu.pipeline_mode<synchronous>, transform_indices = @transform_2, window_bounds = array<i64: 1, 128>}, {transform_indices = @transform_3, window_bounds = array<i64: 512, 128>}]} {
    %c0 = arith.constant 0 : index
    %c0_0 = arith.constant 0 : index
    %0 = vector.load %arg1[%c0, %c0_0] : memref<512x128xbf16, #tpu.memory_space<vmem>>, vector<512x128xbf16>
    %1 = arith.extf %0 : vector<512x128xbf16> to vector<512x128xf32>
    %c0_1 = arith.constant 0 : index
    %c0_2 = arith.constant 0 : index
    %2 = vector.load %arg2[%c0_1, %c0_2] : memref<1x128xf32, #tpu.memory_space<vmem>>, vector<1x128xf32>
    %3 = vector.broadcast %2 : vector<1x128xf32> to vector<512x128xf32>
    %4 = arith.mulf %1, %3 : vector<512x128xf32>
    %c0_3 = arith.constant 0 : index
    %c0_4 = arith.constant 0 : index
    %5 = vector.load %arg3[%c0_3, %c0_4] : memref<1x128xf32, #tpu.memory_space<vmem>>, vector<1x128xf32>
    %6 = vector.broadcast %5 : vector<1x128xf32> to vector<512x128xf32>
    %7 = arith.addf %4, %6 : vector<512x128xf32>
    %cst = arith.constant 0.000000e+00 : f32
    %8 = vector.broadcast %cst : f32 to vector<512x128xf32>
    %9 = arith.maximumf %7, %8 : vector<512x128xf32>
    %10 = arith.truncf %9 : vector<512x128xf32> to vector<512x128xbf16>
    %c0_5 = arith.constant 0 : index
    %c0_6 = arith.constant 0 : index
    %11 = vector.load %arg4[%c0_5, %c0_6] : memref<512x128xbf16, #tpu.memory_space<vmem>>, vector<512x128xbf16>
    tpu.vector_store %arg4[%c0_5, %c0_6], %10 {strides = array<i32>} : memref<512x128xbf16, #tpu.memory_space<vmem>>, vector<512x128xbf16>,
    return
  }
  func.func @transform_0(%arg0: i32) -> (i32, i32) {
    %c0_i32 = arith.constant 0 : i32
    %c0_i32_0 = arith.constant 0 : i32
    return %arg0, %c0_i32 : i32, i32
  }
  func.func @transform_1(%arg0: i32) -> (i32, i32) {
    %c0_i32 = arith.constant 0 : i32
    %c0_i32_0 = arith.constant 0 : i32
    %c0_i32_1 = arith.constant 0 : i32
    return %c0_i32, %c0_i32_0 : i32, i32
  }
  func.func @transform_2(%arg0: i32) -> (i32, i32) {
    %c0_i32 = arith.constant 0 : i32
    %c0_i32_0 = arith.constant 0 : i32
    %c0_i32_1 = arith.constant 0 : i32
    return %c0_i32, %c0_i32_0 : i32, i32
  }
  func.func @transform_3(%arg0: i32) -> (i32, i32) {
    %c0_i32 = arith.constant 0 : i32
    %c0_i32_0 = arith.constant 0 : i32
    return %arg0, %c0_i32 : i32, i32
  }
}

</mosaic_0001>

<bundles_post_ra>
// kernel: conv_down_forward.2
= control target key start
LH: loop header
LB: loop body
LE: loop exit
PB: predicated region body
PF: predicated region fallthrough
CT: control target
= control target key end

     0   :  { %s1612_s15 = smov 0   ;;  %s2027_s0 = inlined_call_operand.vmem [shape: bf16[1024,128], index: 0, kind: input, shape index: {}]   ;;  %s2028_s1 = inlined_call_operand.vmem [shape: bf16[128,128], index: 1, kind: input, shape index: {}]   ;;  %s2029_s2 = inlined_call_operand.vmem [shape: bf16[1024,128], index: 2, kind: output, shape index: {0}]   ;;  %s2030_s3 = inlined_call_operand.vmem [shape: f32[2,1,128], index: 3, kind: output, shape index: {1}]   ;;  %s2031_s4 = inlined_call_operand.vmem [shape: f32[2,1,128], index: 4, kind: output, shape index: {2}]  }
   0x1 LB: > { %s1618_s16 = sadd.s32 4294967295, %s1585_s15   ;;  %p1149_p0 = scmp.ge.s32.totalorder %s1585_s15, 1  ;;  %s1585_s15 = sphi %s1612_s15, %s15_s15  }
   0x2   : > { %p168_p1 = scmp.lt.s32.totalorder %s1585_s15, 3 }
   0x4   : > { %p169_p2 = pnand %p1149_p0, %p168_p1 }
   0x5   : > { %s1150_s25 = sshll.u32 (!%p169_p2), %s1618_s16, 6  ;;  %p212_p4 = scmp.lt.s32.totalorder (!%p169_p2), %s1618_s16, 1 }
   0x6   : > { %172 = sbr.rel (%p169_p2) target bundleno = 402 (0x192), region = 28  ;;  %p201_p3 = scmp.lt.s32.totalorder (!%p169_p2), %s1150_s25, 127 }
   0xb   : > { %v1355_v0 = vld [vmem:[%s2028_s1 + $0x38] sm:$0xff]  ;;  %v1354_v1 = vld [vmem:[%s2028_s1 + $0x30] sm:$0xff]  ;;  %v1353_v2 = vld [vmem:[%s2028_s1 + $0x28] sm:$0xff]  ;;  %s2033_s25 = smov (!%p201_p3, %s1150_s25), 127  ;;  %s2035_s16 = smov (!%p212_p4, %s1618_s16), 1 }
   0xc   : > { %538 = vmatpush.bf16.msra.mxu0 %v1355_v0  ;;  %1547 = vmatpush.bf16.msra.mxu1 %v1355_v0  ;;  %v1352_v3 = vld [vmem:[%s2028_s1 + $0x20] sm:$0xff]  ;;  %v1351_v4 = vld [vmem:[%s2028_s1 + $0x18] sm:$0xff]  ;;  %v1350_v5 = vld [vmem:[%s2028_s1 + $0x10] sm:$0xff]  ;;  %s1151_s6 = sshll.u32 %s2033_s25, 2  ;;  %s214_s19 = scalar_lea.vmem %s2030_s3, %s2035_s16 }
   0xd   : > { %1548 = vmatpush.bf16.msra.mxu2 %v1355_v0  ;;  %1549 = vmatpush.bf16.msra.mxu3 %v1355_v0  ;;  %v1349_v6 = vld [vmem:[%s2028_s1 + $0x8] sm:$0xff]  ;;  %v1348_v7 = vld [vmem:[%s2028_s1] sm:$0xff]  ;;  %s1655_s11 = scalar_lea.vmem %s2027_s0, %s1151_s6  ;;  %s1694_s14 = scalar_lea.vmem %s2029_s2, %s1151_s6 }
   0xe   : > { %v1316_v8 = vld [vmem:[%s1655_s11] sm:$0xff]  ;;  %v1317_v10 = vld [vmem:[%s1655_s11 + $0x8] sm:$0xff]  ;;  %v1318_v13 = vld [vmem:[%s1655_s11 + $0x10] sm:$0xff]  ;;  %s217_s22 = scalar_lea.vmem %s2031_s4, %s2035_s16 }
   0xf   : > { %v1324_v9 = vld [vmem:[%s1655_s11 + $0x40] sm:$0xff]  ;;  %v1325_v11 = vld [vmem:[%s1655_s11 + $0x48] sm:$0xff]  ;;  %v1326_v14 = vld [vmem:[%s1655_s11 + $0x50] sm:$0xff] }
  0x10   : > { %539 = vmatpush.bf16.msra.mxu0 %v1354_v1  ;;  %1550 = vmatpush.bf16.msra.mxu1 %v1354_v1  ;;  %v1332_v12 = vld [vmem:[%s1655_s11 + $0x80] sm:$0xff]  ;;  %v1333_v15 = vld [vmem:[%s1655_s11 + $0x88] sm:$0xff]  ;;  %v1319_v16 = vld [vmem:[%s1655_s11 + $0x18] sm:$0xff] }
  0x11   : > { %1551 = vmatpush.bf16.msra.mxu2 %v1354_v1  ;;  %1552 = vmatpush.bf16.msra.mxu3 %v1354_v1  ;;  %v1327_v17 = vld [vmem:[%s1655_s11 + $0x58] sm:$0xff]  ;;  %v1334_v18 = vld [vmem:[%s1655_s11 + $0x90] sm:$0xff]  ;;  %v1340_v19 = vld [vmem:[%s1655_s11 + $0xc0] sm:$0xff] }
  0x12   : > { %v1320_v20 = vld [vmem:[%s1655_s11 + $0x20] sm:$0xff]  ;;  %v1335_v22 = vld [vmem:[%s1655_s11 + $0x98] sm:$0xff]  ;;  %v1341_v23 = vld [vmem:[%s1655_s11 + $0xc8] sm:$0xff] }
  0x13   : > { %v1328_v21 = vld [vmem:[%s1655_s11 + $0x60] sm:$0xff]  ;;  %v1321_v24 = vld [vmem:[%s1655_s11 + $0x28] sm:$0xff]  ;;  %v1342_v27 = vld [vmem:[%s1655_s11 + $0xd0] sm:$0xff] }
  0x14   : > { %540 = vmatpush.bf16.msra.mxu0 %v1353_v2  ;;  %1553 = vmatpush.bf16.msra.mxu1 %v1353_v2  ;;  %v1329_v25 = vld [vmem:[%s1655_s11 + $0x68] sm:$0xff]  ;;  %v1336_v26 = vld [vmem:[%s1655_s11 + $0xa0] sm:$0xff]  ;;  %v1322_v28 = vld [vmem:[%s1655_s11 + $0x30] sm:$0xff] }
  0x15   : > { %1554 = vmatpush.bf16.msra.mxu2 %v1353_v2  ;;  %1555 = vmatpush.bf16.msra.mxu3 %v1353_v2  ;;  %v1330_v29 = vld [vmem:[%s1655_s11 + $0x70] sm:$0xff]  ;;  %v1337_v30 = vld [vmem:[%s1655_s11 + $0xa8] sm:$0xff]  ;;  %v1343_v31 = vld [vmem:[%s1655_s11 + $0xd8] sm:$0xff] }
  0x16   : > { %v1323_v32 = vld [vmem:[%s1655_s11 + $0x38] sm:$0xff]  ;;  %v1338_v34 = vld [vmem:[%s1655_s11 + $0xb0] sm:$0xff]  ;;  %v1344_v35 = vld [vmem:[%s1655_s11 + $0xe0] sm:$0xff] }
  0x17   : > { %v1331_v33 = vld [vmem:[%s1655_s11 + $0x78] sm:$0xff]  ;;  %v1345_v39 = vld [vmem:[%s1655_s11 + $0xe8] sm:$0xff]  ;;  %v1346_v53 = vld [vmem:[%s1655_s11 + $0xf0] sm:$0xff] }
  0x18   : > { %541 = vmatpush.bf16.msra.mxu0 %v1352_v3  ;;  %1556 = vmatpush.bf16.msra.mxu1 %v1352_v3  ;;  %v1339_v38 = vld [vmem:[%s1655_s11 + $0xb8] sm:$0xff] }
  0x19   : > { %1557 = vmatpush.bf16.msra.mxu2 %v1352_v3  ;;  %1558 = vmatpush.bf16.msra.mxu3 %v1352_v3 }
  0x1c   : > { %542 = vmatpush.bf16.msra.mxu0 %v1351_v4  ;;  %1559 = vmatpush.bf16.msra.mxu1 %v1351_v4 }
  0x1d   : > { %1560 = vmatpush.bf16.msra.mxu2 %v1351_v4  ;;  %1561 = vmatpush.bf16.msra.mxu3 %v1351_v4 }
  0x20   : > { %543 = vmatpush.bf16.msra.mxu0 %v1350_v5  ;;  %1562 = vmatpush.bf16.msra.mxu1 %v1350_v5 }
  0x21   : > { %1563 = vmatpush.bf16.msra.mxu2 %v1350_v5  ;;  %1564 = vmatpush.bf16.msra.mxu3 %v1350_v5  ;;  %v1347_v5 = vld [vmem:[%s1655_s11 + $0xf8] sm:$0xff] }
  0x24   : > { %544 = vmatpush.bf16.msra.mxu0 %v1349_v6  ;;  %1565 = vmatpush.bf16.msra.mxu1 %v1349_v6 }
  0x25   : > { %1566 = vmatpush.bf16.msra.mxu2 %v1349_v6  ;;  %1567 = vmatpush.bf16.msra.mxu3 %v1349_v6 }
  0x28   : > { %545 = vmatpush.bf16.msra.mxu0 %v1348_v7  ;;  %1568 = vmatpush.bf16.msra.mxu1 %v1348_v7 }
  0x29   : > { %1569 = vmatpush.bf16.msra.mxu2 %v1348_v7  ;;  %1570 = vmatpush.bf16.msra.mxu3 %v1348_v7 }
  0x2b   : > { %546 = vmatmul.bf16.vlgmr.msra.gmra.mxu0 %v1316_v8  ;;  %586 = vmatmul.bf16.vlgmr.msra.gmra.mxu1 %v1324_v9 }
  0x2c   : > { %626 = vmatmul.bf16.vlgmr.msra.gmra.mxu2 %v1332_v12  ;;  %666 = vmatmul.bf16.vlgmr.msra.gmra.mxu3 %v1340_v19 }
  0x3b   : > { %551 = vmatmul.bf16.gmra.mxu0 %v1317_v10  ;;  %591 = vmatmul.bf16.gmra.mxu1 %v1325_v11 }
  0x3c   : > { %631 = vmatmul.bf16.gmra.mxu2 %v1333_v15  ;;  %671 = vmatmul.bf16.gmra.mxu3 %v1341_v23 }
  0x4b   : > { %556 = vmatmul.bf16.gmra.mxu0 %v1318_v13  ;;  %596 = vmatmul.bf16.gmra.mxu1 %v1326_v14 }
  0x4c   : > { %636 = vmatmul.bf16.gmra.mxu2 %v1334_v18  ;;  %676 = vmatmul.bf16.gmra.mxu3 %v1342_v27 }
  0x5b   : > { %561 = vmatmul.bf16.gmra.mxu0 %v1319_v16  ;;  %601 = vmatmul.bf16.gmra.mxu1 %v1327_v17 }
  0x5c   : > { %641 = vmatmul.bf16.gmra.mxu2 %v1335_v22  ;;  %681 = vmatmul.bf16.gmra.mxu3 %v1343_v31 }
  0x6b   : > { %566 = vmatmul.bf16.gmra.mxu0 %v1320_v20  ;;  %606 = vmatmul.bf16.gmra.mxu1 %v1328_v21 }
  0x6c   : > { %646 = vmatmul.bf16.gmra.mxu2 %v1336_v26  ;;  %686 = vmatmul.bf16.gmra.mxu3 %v1344_v35 }
  0x7b   : > { %571 = vmatmul.bf16.gmra.mxu0 %v1321_v24  ;;  %611 = vmatmul.bf16.gmra.mxu1 %v1329_v25 }
  0x7c   : > { %651 = vmatmul.bf16.gmra.mxu2 %v1337_v30  ;;  %691 = vmatmul.bf16.gmra.mxu3 %v1345_v39 }
  0x8b   : > { %576 = vmatmul.bf16.gmra.mxu0 %v1322_v28  ;;  %616 = vmatmul.bf16.gmra.mxu1 %v1330_v29 }
  0x8c   : > { %656 = vmatmul.bf16.gmra.mxu2 %v1338_v34  ;;  %696 = vmatmul.bf16.gmra.mxu3 %v1346_v53 }
  0x9b   : > { %581 = vmatmul.bf16.gmra.mxu0 %v1323_v32  ;;  %621 = vmatmul.bf16.gmra.mxu1 %v1331_v33 }
  0x9c   : > { %661 = vmatmul.bf16.gmra.mxu2 %v1339_v38  ;;  %701 = vmatmul.bf16.gmra.mxu3 %v1347_v5 }
  0xa8   : > { %v547_v36 = vpop.f32.mrf.mxu0  ;;  %v1685_v37 = vpop.f32.mrf.mxu1 }
  0xa9   : > { %v905_v40 = vmul.f32 %v547_v36, %v547_v36 }
  0xaf   : > { %v1709_v60 = vpop.f32.mrf.mxu2  ;;  %v1746_v20 = vpop.f32.mrf.mxu3 }
  0xb0   : > { %v549_v41 = vpop.f32.mrf.mxu0  ;;  %v1696_v42 = vpop.f32.mrf.mxu1 }
  0xb1   : > { %v1359_v43 = vpack.c.bf16 %v549_v41, %v547_v36  ;;  %v835_v44 = vadd.f32 %v549_v41, %v547_v36  ;;  %v906_v45 = vmul.f32 %v549_v41, %v549_v41  ;;  %v1399_v46 = vpack.c.bf16 %v1696_v42, %v1685_v37 }
  0xb3   : > { %1360 = vst [vmem:[%s1694_s14] sm:$0xff] %v1359_v43   ;;  %v969_v47 = vadd.f32 %v906_v45, %v905_v40 }
  0xb4   : > { %1523 = vst [vmem:[%s1694_s14 + $0x40] sm:$0xff] %v1399_v46  }
  0xb7   : > { %v1717_v2 = vpop.f32.mrf.mxu2  ;;  %v1754_v24 = vpop.f32.mrf.mxu3 }
  0xb8   : > { %v552_v48 = vpop.f32.mrf.mxu0  ;;  %v1702_v49 = vpop.f32.mrf.mxu1  ;;  %v1439_v3 = vpack.c.bf16 %v1717_v2, %v1709_v60  ;;  %v1479_v26 = vpack.c.bf16 %v1754_v24, %v1746_v20 }
  0xb9   : > { %v836_v50 = vadd.f32 %v835_v44, %v552_v48  ;;  %v907_v51 = vmul.f32 %v552_v48, %v552_v48 }
  0xba   : > { %1531 = vst [vmem:[%s1694_s14 + $0x80] sm:$0xff] %v1439_v3  }
  0xbb   : > { %v970_v52 = vadd.f32 %v969_v47, %v907_v51  ;;  %1539 = vst [vmem:[%s1694_s14 + $0xc0] sm:$0xff] %v1479_v26  }
  0xbf   : > { %v1729_v10 = vpop.f32.mrf.mxu2  ;;  %v1768_v32 = vpop.f32.mrf.mxu3 }
  0xc0   : > { %v554_v54 = vpop.f32.mrf.mxu0  ;;  %v1705_v55 = vpop.f32.mrf.mxu1 }
  0xc1   : > { %v1364_v56 = vpack.c.bf16 %v554_v54, %v552_v48  ;;  %v837_v57 = vadd.f32 %v836_v50, %v554_v54  ;;  %v908_v58 = vmul.f32 %v554_v54, %v554_v54  ;;  %v1404_v59 = vpack.c.bf16 %v1705_v55, %v1702_v49 }
  0xc3   : > { %1516 = vst [vmem:[%s1694_s14 + $0x8] sm:$0xff] %v1364_v56   ;;  %v971_v61 = vadd.f32 %v970_v52, %v908_v58 }
  0xc4   : > { %1524 = vst [vmem:[%s1694_s14 + $0x48] sm:$0xff] %v1404_v59  }
  0xc7   : > { %v1735_v13 = vpop.f32.mrf.mxu2  ;;  %v1776_v36 = vpop.f32.mrf.mxu3 }
  0xc8   : > { %v557_v62 = vpop.f32.mrf.mxu0  ;;  %v1713_v63 = vpop.f32.mrf.mxu1  ;;  %v1444_v14 = vpack.c.bf16 %v1735_v13, %v1729_v10  ;;  %v1484_v39 = vpack.c.bf16 %v1776_v36, %v1768_v32 }
  0xc9   : > { %v1715_v0 = vadd.f32 %v837_v57, %v557_v62  ;;  %v909_v1 = vmul.f32 %v557_v62, %v557_v62 }
  0xca   : > { %1532 = vst [vmem:[%s1694_s14 + $0x88] sm:$0xff] %v1444_v14  }
  0xcb   : > { %v1721_v4 = vadd.f32 %v971_v61, %v909_v1  ;;  %1540 = vst [vmem:[%s1694_s14 + $0xc8] sm:$0xff] %v1484_v39  }
  0xcf   : > { %v1744_v19 = vpop.f32.mrf.mxu2  ;;  %v1790_v46 = vpop.f32.mrf.mxu3 }
  0xd0   : > { %v559_v6 = vpop.f32.mrf.mxu0  ;;  %v1725_v7 = vpop.f32.mrf.mxu1 }
  0xd1   : > { %v1369_v8 = vpack.c.bf16 %v559_v6, %v557_v62  ;;  %v1409_v9 = vpack.c.bf16 %v1725_v7, %v1713_v63  ;;  %v910_v52 = vmul.f32 %v559_v6, %v559_v6  ;;  %v839_v57 = vadd.f32 %v1715_v0, %v559_v6 }
  0xd3   : > { %1517 = vst [vmem:[%s1694_s14 + $0x10] sm:$0xff] %v1369_v8   ;;  %v973_v58 = vadd.f32 %v1721_v4, %v910_v52 }
  0xd4   : > { %1525 = vst [vmem:[%s1694_s14 + $0x50] sm:$0xff] %v1409_v9  }
  0xd7   : > { %v1752_v23 = vpop.f32.mrf.mxu2  ;;  %v1798_v51 = vpop.f32.mrf.mxu3 }
  0xd8   : > { %v562_v11 = vpop.f32.mrf.mxu0  ;;  %v1733_v12 = vpop.f32.mrf.mxu1  ;;  %v1449_v25 = vpack.c.bf16 %v1752_v23, %v1744_v19  ;;  %v1489_v54 = vpack.c.bf16 %v1798_v51, %v1790_v46 }
  0xd9   : > { %v911_v56 = vmul.f32 %v562_v11, %v562_v11  ;;  %v840_v61 = vadd.f32 %v839_v57, %v562_v11 }
  0xda   : > { %1533 = vst [vmem:[%s1694_s14 + $0x90] sm:$0xff] %v1449_v25  }
  0xdb   : > { %1541 = vst [vmem:[%s1694_s14 + $0xd0] sm:$0xff] %v1489_v54   ;;  %v974_v62 = vadd.f32 %v973_v58, %v911_v56 }
  0xdf   : > { %v1766_v31 = vpop.f32.mrf.mxu2  ;;  %v1814_v0 = vpop.f32.mrf.mxu3 }
  0xe0   : > { %v564_v15 = vpop.f32.mrf.mxu0  ;;  %v1740_v16 = vpop.f32.mrf.mxu1 }
  0xe1   : > { %v1374_v17 = vpack.c.bf16 %v564_v15, %v562_v11  ;;  %v1414_v18 = vpack.c.bf16 %v1740_v16, %v1733_v12  ;;  %v912_v59 = vmul.f32 %v564_v15, %v564_v15  ;;  %v841_v8 = vadd.f32 %v840_v61, %v564_v15 }
  0xe3   : > { %1518 = vst [vmem:[%s1694_s14 + $0x18] sm:$0xff] %v1374_v17   ;;  %v975_v6 = vadd.f32 %v974_v62, %v912_v59 }
  0xe4   : > { %1526 = vst [vmem:[%s1694_s14 + $0x58] sm:$0xff] %v1414_v18  }
  0xe7   : > { %v1774_v35 = vpop.f32.mrf.mxu2  ;;  %v1822_v54 = vpop.f32.mrf.mxu3 }
  0xe8   : > { %v567_v21 = vpop.f32.mrf.mxu0  ;;  %v1750_v22 = vpop.f32.mrf.mxu1  ;;  %v1454_v38 = vpack.c.bf16 %v1774_v35, %v1766_v31  ;;  %v1494_v57 = vpack.c.bf16 %v1822_v54, %v1814_v0 }
  0xe9   : > { %v913_v1 = vmul.f32 %v567_v21, %v567_v21  ;;  %v842_v4 = vadd.f32 %v841_v8, %v567_v21 }
  0xea   : > { %1534 = vst [vmem:[%s1694_s14 + $0x98] sm:$0xff] %v1454_v38  }
  0xeb   : > { %v976_v11 = vadd.f32 %v975_v6, %v913_v1  ;;  %1542 = vst [vmem:[%s1694_s14 + $0xd8] sm:$0xff] %v1494_v57  }
  0xef   : > { %v1788_v45 = vpop.f32.mrf.mxu2 }
  0xf0   : > { %v569_v27 = vpop.f32.mrf.mxu0  ;;  %v1762_v28 = vpop.f32.mrf.mxu1 }
  0xf1   : > { %v1379_v29 = vpack.c.bf16 %v569_v27, %v567_v21  ;;  %v1419_v30 = vpack.c.bf16 %v1762_v28, %v1750_v22  ;;  %v914_v18 = vmul.f32 %v569_v27, %v569_v27  ;;  %v843_v26 = vadd.f32 %v842_v4, %v569_v27 }
  0xf3   : > { %1519 = vst [vmem:[%s1694_s14 + $0x20] sm:$0xff] %v1379_v29   ;;  %v977_v29 = vadd.f32 %v976_v11, %v914_v18  ;;  %v1836_v11 = vpop.f32.mrf.mxu3 }
  0xf4   : > { %1527 = vst [vmem:[%s1694_s14 + $0x60] sm:$0xff] %v1419_v30  }
  0xf7   : > { %v1796_v50 = vpop.f32.mrf.mxu2 }
  0xf8   : > { %v572_v33 = vpop.f32.mrf.mxu0  ;;  %v1772_v34 = vpop.f32.mrf.mxu1  ;;  %v1459_v53 = vpack.c.bf16 %v1796_v50, %v1788_v45 }
  0xf9   : > { %v915_v25 = vmul.f32 %v572_v33, %v572_v33  ;;  %v844_v15 = vadd.f32 %v843_v26, %v572_v33 }
  0xfa   : > { %1535 = vst [vmem:[%s1694_s14 + $0xa0] sm:$0xff] %v1459_v53  }
  0xfb   : > { %v978_v38 = vadd.f32 %v977_v29, %v915_v25  ;;  %v922_v29 = vmul.f32 %v1696_v42, %v1696_v42 }
  0xff   : > { %v1812_v17 = vpop.f32.mrf.mxu2 }
 0x100   : > { %v574_v40 = vpop.f32.mrf.mxu0  ;;  %v1784_v41 = vpop.f32.mrf.mxu1 }
 0x101   : > { %v1384_v43 = vpack.c.bf16 %v574_v40, %v572_v33  ;;  %v1424_v44 = vpack.c.bf16 %v1784_v41, %v1772_v34  ;;  %v916_v30 = vmul.f32 %v574_v40, %v574_v40  ;;  %v845_v52 = vadd.f32 %v844_v15, %v574_v40 }
 0x103   : > { %1520 = vst [vmem:[%s1694_s14 + $0x28] sm:$0xff] %v1384_v43   ;;  %v979_v21 = vadd.f32 %v978_v38, %v916_v30  ;;  %v923_v38 = vmul.f32 %v1702_v49, %v1702_v49 }
 0x104   : > { %1528 = vst [vmem:[%s1694_s14 + $0x68] sm:$0xff] %v1424_v44  }
 0x107   : > { %v1820_v53 = vpop.f32.mrf.mxu2 }
 0x108   : > { %v577_v47 = vpop.f32.mrf.mxu0  ;;  %v1794_v48 = vpop.f32.mrf.mxu1  ;;  %v1464_v27 = vpack.c.bf16 %v1820_v53, %v1812_v17 }
 0x109   : > { %v917_v39 = vmul.f32 %v577_v47, %v577_v47  ;;  %v846_v33 = vadd.f32 %v845_v52, %v577_v47  ;;  %v924_v52 = vmul.f32 %v1705_v55, %v1705_v55 }
 0x10a   : > { %1536 = vst [vmem:[%s1694_s14 + $0xa8] sm:$0xff] %v1464_v27   ;;  %v1854_v27 = vpop.f32.mrf.mxu3 }
 0x10b   : > { %v980_v58 = vadd.f32 %v979_v21, %v917_v39  ;;  %v1499_v57 = vpack.c.bf16 %v1854_v27, %v1836_v11 }
 0x10d   : > { %1543 = vst [vmem:[%s1694_s14 + $0xe0] sm:$0xff] %v1499_v57  }
 0x110   : > { %v579_v3 = vpop.f32.mrf.mxu0  ;;  %v1808_v5 = vpop.f32.mrf.mxu1 }
 0x111   : > { %v1389_v9 = vpack.c.bf16 %v579_v3, %v577_v47  ;;  %v1429_v14 = vpack.c.bf16 %v1808_v5, %v1794_v48  ;;  %v918_v56 = vmul.f32 %v579_v3, %v579_v3  ;;  %v847_v61 = vadd.f32 %v846_v33, %v579_v3  ;;  %v1834_v47 = vpop.f32.mrf.mxu2 }
 0x112   : > { %v921_v3 = vmul.f32 %v1685_v37, %v1685_v37  ;;  %v934_v57 = vmul.f32 %v1808_v5, %v1808_v5 }
 0x113   : > { %1521 = vst [vmem:[%s1694_s14 + $0x30] sm:$0xff] %v1389_v9   ;;  %v981_v40 = vadd.f32 %v980_v58, %v918_v56 }
 0x114   : > { %1529 = vst [vmem:[%s1694_s14 + $0x70] sm:$0xff] %v1429_v14  }
 0x118   : > { %v582_v43 = vpop.f32.mrf.mxu0  ;;  %v1818_v44 = vpop.f32.mrf.mxu1 }
 0x119   : > { %v919_v59 = vmul.f32 %v582_v43, %v582_v43  ;;  %v848_v62 = vadd.f32 %v847_v61, %v582_v43  ;;  %v1852_v56 = vpop.f32.mrf.mxu2 }
 0x11b   : > { %v982_v1 = vadd.f32 %v981_v40, %v919_v59  ;;  %v927_v40 = vmul.f32 %v1733_v12, %v1733_v12 }
 0x120   : > { %v584_v8 = vpop.f32.mrf.mxu0  ;;  %v1830_v9 = vpop.f32.mrf.mxu1 }
 0x121   : > { %v1394_v14 = vpack.c.bf16 %v584_v8, %v582_v43  ;;  %v849_v6 = vadd.f32 %v848_v62, %v584_v8  ;;  %v920_v18 = vmul.f32 %v584_v8, %v584_v8  ;;  %v1434_v4 = vpack.c.bf16 %v1830_v9, %v1818_v44 }
 0x122   : > { %v928_v8 = vmul.f32 %v1740_v16, %v1740_v16 }
 0x123   : > { %1522 = vst [vmem:[%s1694_s14 + $0x38] sm:$0xff] %v1394_v14   ;;  %v850_v25 = vadd.f32 %v849_v6, %v1685_v37  ;;  %v983_v26 = vadd.f32 %v982_v1, %v920_v18  ;;  %v1874_v6 = vpop.f32.mrf.mxu2  ;;  %v1876_v18 = vpop.f32.mrf.mxu3 }
 0x124   : > { %1530 = vst [vmem:[%s1694_s14 + $0x78] sm:$0xff] %v1434_v4  }
 0x125   : > { %v851_v30 = vadd.f32 %v850_v25, %v1696_v42  ;;  %v984_v15 = vadd.f32 %v983_v26, %v921_v3  ;;  %v1469_v42 = vpack.c.bf16 %v1852_v56, %v1834_v47  ;;  %v930_v25 = vmul.f32 %v1762_v28, %v1762_v28 }
 0x127   : > { %v852_v39 = vadd.f32 %v851_v30, %v1702_v49  ;;  %v985_v43 = vadd.f32 %v984_v15, %v922_v29  ;;  %v925_v49 = vmul.f32 %v1713_v63, %v1713_v63  ;;  %1537 = vst [vmem:[%s1694_s14 + $0xb0] sm:$0xff] %v1469_v42   ;;  %v932_v15 = vmul.f32 %v1784_v41, %v1784_v41 }
 0x129   : > { %v853_v37 = vadd.f32 %v852_v39, %v1705_v55  ;;  %v986_v21 = vadd.f32 %v985_v43, %v923_v38  ;;  %v926_v55 = vmul.f32 %v1725_v7, %v1725_v7 }
 0x12b   : > { %v854_v33 = vadd.f32 %v853_v37, %v1713_v63  ;;  %v987_v58 = vadd.f32 %v986_v21, %v924_v52  ;;  %v1890_v39 = vpop.f32.mrf.mxu2  ;;  %v1892_v43 = vpop.f32.mrf.mxu3  ;;  %v933_v37 = vmul.f32 %v1794_v48, %v1794_v48 }
 0x12c   : > { %v1504_v52 = vpack.c.bf16 %v1892_v43, %v1876_v18 }
 0x12d   : > { %v855_v59 = vadd.f32 %v854_v33, %v1725_v7  ;;  %v988_v61 = vadd.f32 %v987_v58, %v925_v49  ;;  %v929_v7 = vmul.f32 %v1750_v22, %v1750_v22  ;;  %v935_v58 = vmul.f32 %v1818_v44, %v1818_v44 }
 0x12e   : > { %1544 = vst [vmem:[%s1694_s14 + $0xe8] sm:$0xff] %v1504_v52   ;;  %v945_v52 = vmul.f32 %v1788_v45, %v1788_v45 }
 0x12f   : > { %v989_v62 = vadd.f32 %v988_v61, %v926_v55  ;;  %v856_v1 = vadd.f32 %v855_v59, %v1733_v12 }
 0x131   : > { %v857_v63 = vadd.f32 %v856_v1, %v1740_v16  ;;  %v990_v14 = vadd.f32 %v989_v62, %v927_v40  ;;  %v931_v16 = vmul.f32 %v1772_v34, %v1772_v34  ;;  %v937_v40 = vmul.f32 %v1709_v60, %v1709_v60 }
 0x132   : > { %v938_v1 = vmul.f32 %v1717_v2, %v1717_v2 }
 0x133   : > { %v858_v4 = vadd.f32 %v857_v63, %v1750_v22  ;;  %v991_v3 = vadd.f32 %v990_v14, %v928_v8  ;;  %v1912_v61 = vpop.f32.mrf.mxu3  ;;  %v939_v63 = vmul.f32 %v1729_v10, %v1729_v10 }
 0x135   : > { %v859_v12 = vadd.f32 %v858_v4, %v1762_v28  ;;  %v992_v26 = vadd.f32 %v991_v3, %v929_v7  ;;  %v1474_v28 = vpack.c.bf16 %v1890_v39, %v1874_v6  ;;  %v940_v7 = vmul.f32 %v1735_v13, %v1735_v13 }
 0x137   : > { %v860_v29 = vadd.f32 %v859_v12, %v1772_v34  ;;  %v993_v30 = vadd.f32 %v992_v26, %v930_v25  ;;  %1538 = vst [vmem:[%s1694_s14 + $0xb8] sm:$0xff] %v1474_v28  }
 0x139   : > { %v861_v22 = vadd.f32 %v860_v29, %v1784_v41  ;;  %v994_v38 = vadd.f32 %v993_v30, %v931_v16 }
 0x13b   : > { %v862_v34 = vadd.f32 %v861_v22, %v1794_v48  ;;  %v995_v21 = vadd.f32 %v994_v38, %v932_v15  ;;  %v936_v48 = vmul.f32 %v1830_v9, %v1830_v9  ;;  %v1926_v3 = vpop.f32.mrf.mxu3  ;;  %v944_v22 = vmul.f32 %v1774_v35, %v1774_v35 }
 0x13c   : > { %v1509_v25 = vpack.c.bf16 %v1926_v3, %v1912_v61 }
 0x13d   : > { %v996_v42 = vadd.f32 %v995_v21, %v933_v37  ;;  %v863_v41 = vadd.f32 %v862_v34, %v1808_v5  ;;  %v946_v37 = vmul.f32 %v1796_v50, %v1796_v50 }
 0x13e   : > { %1545 = vst [vmem:[%s1694_s14 + $0xf0] sm:$0xff] %v1509_v25  }
 0x13f   : > { %v997_v49 = vadd.f32 %v996_v42, %v934_v57  ;;  %v864_v33 = vadd.f32 %v863_v41, %v1818_v44  ;;  %v947_v42 = vmul.f32 %v1812_v17, %v1812_v17 }
 0x141   : > { %v998_v55 = vadd.f32 %v997_v49, %v935_v58  ;;  %v865_v59 = vadd.f32 %v864_v33, %v1830_v9  ;;  %v948_v49 = vmul.f32 %v1820_v53, %v1820_v53 }
 0x143   : > { %v866_v5 = vadd.f32 %v865_v59, %v1709_v60  ;;  %v999_v62 = vadd.f32 %v998_v55, %v936_v48  ;;  %v1943_v28 = vpop.f32.mrf.mxu3 }
 0x145   : > { %v867_v44 = vadd.f32 %v866_v5, %v1717_v2  ;;  %v1000_v8 = vadd.f32 %v999_v62, %v937_v40  ;;  %v941_v2 = vmul.f32 %v1744_v19, %v1744_v19  ;;  %v950_v40 = vmul.f32 %v1852_v56, %v1852_v56 }
 0x146   : > { %v951_v62 = vmul.f32 %v1874_v6, %v1874_v6 }
 0x147   : > { %v868_v9 = vadd.f32 %v867_v44, %v1729_v10  ;;  %v1001_v14 = vadd.f32 %v1000_v8, %v938_v1  ;;  %v942_v10 = vmul.f32 %v1752_v23, %v1752_v23  ;;  %v952_v8 = vmul.f32 %v1890_v39, %v1890_v39 }
 0x149   : > { %v869_v4 = vadd.f32 %v868_v9, %v1735_v13  ;;  %v1002_v60 = vadd.f32 %v1001_v14, %v939_v63  ;;  %v943_v13 = vmul.f32 %v1766_v31, %v1766_v31 }
 0x14b   : > { %v870_v12 = vadd.f32 %v869_v4, %v1744_v19  ;;  %v1003_v26 = vadd.f32 %v1002_v60, %v940_v7  ;;  %v704_v33 = vpop.f32.mrf.mxu3 }
 0x14c   : > { %v1514_v58 = vpack.c.bf16 %v704_v33, %v1943_v28 }
 0x14d   : > { %v871_v16 = vadd.f32 %v870_v12, %v1752_v23  ;;  %v1004_v29 = vadd.f32 %v1003_v26, %v941_v2 }
 0x14e   : > { %1546 = vst [vmem:[%s1694_s14 + $0xf8] sm:$0xff] %v1514_v58   ;;  %v968_v58 = vmul.f32 %v704_v33, %v704_v33 }
 0x14f   : > { %v1005_v30 = vadd.f32 %v1004_v29, %v942_v10  ;;  %v872_v15 = vadd.f32 %v871_v16, %v1766_v31 }
 0x151   : > { %v873_v38 = vadd.f32 %v872_v15, %v1774_v35  ;;  %v1006_v19 = vadd.f32 %v1005_v30, %v943_v13 }
 0x153   : > { %v874_v23 = vadd.f32 %v873_v38, %v1788_v45  ;;  %v1007_v34 = vadd.f32 %v1006_v19, %v944_v22 }
 0x155   : > { %v875_v31 = vadd.f32 %v874_v23, %v1796_v50  ;;  %v1008_v21 = vadd.f32 %v1007_v34, %v945_v52  ;;  %v949_v50 = vmul.f32 %v1834_v47, %v1834_v47 }
 0x157   : > { %v876_v35 = vadd.f32 %v875_v31, %v1812_v17  ;;  %v1009_v41 = vadd.f32 %v1008_v21, %v946_v37  ;;  %v964_v37 = vmul.f32 %v1892_v43, %v1892_v43 }
 0x159   : > { %v877_v57 = vadd.f32 %v876_v35, %v1820_v53  ;;  %v1010_v45 = vadd.f32 %v1009_v41, %v947_v42 }
 0x15b   : > { %v1011_v55 = vadd.f32 %v1010_v45, %v948_v49  ;;  %v878_v59 = vadd.f32 %v877_v57, %v1834_v47  ;;  %v953_v47 = vmul.f32 %v1746_v20, %v1746_v20 }
 0x15d   : > { %v1012_v48 = vadd.f32 %v1011_v55, %v949_v50  ;;  %v879_v17 = vadd.f32 %v878_v59, %v1852_v56  ;;  %v954_v56 = vmul.f32 %v1754_v24, %v1754_v24 }
 0x15f   : > { %v1013_v5 = vadd.f32 %v1012_v48, %v950_v40  ;;  %v880_v53 = vadd.f32 %v879_v17, %v1874_v6  ;;  %v955_v6 = vmul.f32 %v1768_v32, %v1768_v32 }
 0x161   : > { %v1014_v1 = vadd.f32 %v1013_v5, %v951_v62  ;;  %v881_v44 = vadd.f32 %v880_v53, %v1890_v39  ;;  %v956_v39 = vmul.f32 %v1776_v36, %v1776_v36 }
 0x163   : > { %v882_v63 = vadd.f32 %v881_v44, %v1746_v20  ;;  %v1015_v9 = vadd.f32 %v1014_v1, %v952_v8  ;;  %v957_v20 = vmul.f32 %v1790_v46, %v1790_v46 }
 0x165   : > { %v883_v14 = vadd.f32 %v882_v63, %v1754_v24  ;;  %v1016_v7 = vadd.f32 %v1015_v9, %v953_v47  ;;  %v958_v24 = vmul.f32 %v1798_v51, %v1798_v51 }
 0x167   : > { %v884_v4 = vadd.f32 %v883_v14, %v1768_v32  ;;  %v1017_v60 = vadd.f32 %v1016_v7, %v954_v56  ;;  %v959_v32 = vmul.f32 %v1814_v0, %v1814_v0 }
 0x169   : > { %v885_v25 = vadd.f32 %v884_v4, %v1776_v36  ;;  %v1018_v2 = vadd.f32 %v1017_v60, %v955_v6  ;;  %v960_v36 = vmul.f32 %v1822_v54, %v1822_v54 }
 0x16b   : > { %v886_v12 = vadd.f32 %v885_v25, %v1790_v46  ;;  %v1019_v26 = vadd.f32 %v1018_v2, %v956_v39  ;;  %v961_v46 = vmul.f32 %v1836_v11, %v1836_v11 }
 0x16d   : > { %v887_v10 = vadd.f32 %v886_v12, %v1798_v51  ;;  %v1020_v16 = vadd.f32 %v1019_v26, %v957_v20  ;;  %v962_v51 = vmul.f32 %v1854_v27, %v1854_v27 }
 0x16f   : > { %v1021_v29 = vadd.f32 %v1020_v16, %v958_v24  ;;  %v888_v13 = vadd.f32 %v887_v10, %v1814_v0  ;;  %v963_v0 = vmul.f32 %v1876_v18, %v1876_v18 }
 0x171   : > { %v889_v30 = vadd.f32 %v888_v13, %v1822_v54  ;;  %v1022_v15 = vadd.f32 %v1021_v29, %v959_v32 }
 0x173   : > { %v890_v22 = vadd.f32 %v889_v30, %v1836_v11  ;;  %v1023_v38 = vadd.f32 %v1022_v15, %v960_v36 }
 0x175   : > { %v891_v19 = vadd.f32 %v890_v22, %v1854_v27  ;;  %v1024_v52 = vadd.f32 %v1023_v38, %v961_v46  ;;  %v965_v27 = vmul.f32 %v1912_v61, %v1912_v61 }
 0x177   : > { %v892_v23 = vadd.f32 %v891_v19, %v1876_v18  ;;  %v1025_v34 = vadd.f32 %v1024_v52, %v962_v51  ;;  %v966_v18 = vmul.f32 %v1926_v3, %v1926_v3 }
 0x179   : > { %v893_v54 = vadd.f32 %v892_v23, %v1892_v43  ;;  %v1026_v11 = vadd.f32 %v1025_v34, %v963_v0  ;;  %v967_v43 = vmul.f32 %v1943_v28, %v1943_v28 }
 0x17b   : > { %v1027_v31 = vadd.f32 %v1026_v11, %v964_v37  ;;  %v894_v21 = vadd.f32 %v893_v54, %v1912_v61 }
 0x17d   : > { %v1028_v42 = vadd.f32 %v1027_v31, %v965_v27  ;;  %v895_v35 = vadd.f32 %v894_v21, %v1926_v3 }
 0x17f   : > { %v1029_v41 = vadd.f32 %v1028_v42, %v966_v18  ;;  %v896_v57 = vadd.f32 %v895_v35, %v1943_v28 }
 0x181   : > { %v1030_v49 = vadd.f32 %v1029_v41, %v967_v43  ;;  %v897_v45 = vadd.f32 %v896_v57, %v704_v33 }
 0x183   : > { %v898_v55 = vrot.slane %v897_v45, 4  ;;  %v1031_v59 = vadd.f32 %v1030_v49, %v968_v58 }
 0x185   : > { %v899_v61 = vadd.f32 %v898_v55, %v897_v45  ;;  %v1032_v50 = vrot.slane %v1031_v59, 4 }
 0x187   : > { %v900_v48 = vrot.slane %v899_v61, 2  ;;  %v1033_v17 = vadd.f32 %v1032_v50, %v1031_v59 }
 0x189   : > { %v901_v40 = vadd.f32 %v900_v48, %v899_v61  ;;  %v1034_v5 = vrot.slane %v1033_v17, 2 }
 0x18b   : > { %v902_v3 = vrot.slane %v901_v40, 1  ;;  %v1035_v53 = vadd.f32 %v1034_v5, %v1033_v17 }
 0x18d   : > { %v903_v28 = vadd.f32 %v902_v3, %v901_v40  ;;  %v1036_v62 = vrot.slane %v1035_v53, 1 }
 0x18f   : > { %904 = vst [vmem:[%s214_s19] sm:$0x1] %v903_v28  ;;  %v1037_v33 = vadd.f32 %v1036_v62, %v1035_v53 }
 0x191   : > { %1038 = vst [vmem:[%s217_s22] sm:$0x1] %v1037_v33 }
 0x192 PF: > { %s15_s15 = sadd.s32 1, %s1585_s15  }
 0x193   : > { %p12_p5 = scmp.ge.s32.totalorder %s15_s15, 4  }
 0x195   :  { %14 = sbr.rel (!%p12_p5) target bundleno = 1 (0x1), region = 82 }

// kernel: conv_down_forward.3
= control target key start
LH: loop header
LB: loop body
LE: loop exit
PB: predicated region body
PF: predicated region fallthrough
CT: control target
= control target key end

     0   :  { %s1085_s12 = smov 0   ;;  %s1415_s0 = inlined_call_operand.vmem [shape: bf16[1024,128], index: 0, kind: input, shape index: {}, may-alias: {0,3}]   ;;  %s1416_s1 = inlined_call_operand.vmem [shape: f32[1,128], index: 1, kind: input, shape index: {}]   ;;  %s1417_s2 = inlined_call_operand.vmem [shape: f32[1,128], index: 2, kind: input, shape index: {}]   ;;  %s1418_s3 = inlined_call_operand.vmem [shape: bf16[1024,128], index: 3, kind: output, shape index: {}, may-alias: {0,3}]  }
   0x1 LB: > { %s686_s13 = sadd.s32 4294967295, %s1063_s12   ;;  %p690_p0 = scmp.ge.s32.totalorder %s1063_s12, 1  ;;  %s1063_s12 = sphi %s1085_s12, %s13_s12  }
   0x2   : > { %p138_p1 = scmp.lt.s32.totalorder %s1063_s12, 3 }
   0x4   : > { %p139_p2 = pnand %p690_p0, %p138_p1 }
   0x5   : > { %s691_s14 = sshll.u32 (!%p139_p2), %s686_s13, 6 }
   0x6   : > { %142 = sbr.rel (%p139_p2) target bundleno = 93 (0x5d), region = 32  ;;  %p163_p3 = scmp.lt.s32.totalorder (!%p139_p2), %s691_s14, 127 }
   0xb   : > { %s1420_s14 = smov (!%p163_p3, %s691_s14), 127  ;;  %v1106_v0 = vld [vmem:[%s1416_s1] ss:$0 sm:$0xff] }
   0xc   : > { %s692_s15 = sshll.u32 %s1420_s14, 2  ;;  %v1115_v7 = vld [vmem:[%s1417_s2] ss:$0 sm:$0xff] }
   0xd   : > { %s1101_s18 = scalar_lea.vmem %s1415_s0, %s692_s15  ;;  %s1144_s25 = scalar_lea.vmem %s1418_s3, %s692_s15 }
   0xe   : > { %v698_v1 = vld [vmem:[%s1101_s18] sm:$0xff]   ;;  %v985_v2 = vld [vmem:[%s1101_s18 + $0x8] sm:$0xff]   ;;  %v986_v3 = vld [vmem:[%s1101_s18 + $0x10] sm:$0xff]  }
   0xf   : > { %v699_v4 = vunpack.c.l.bf16 %v698_v1  ;;  %v700_v5 = vunpack.c.h.bf16 %v698_v1  ;;  %v987_v6 = vld [vmem:[%s1101_s18 + $0x18] sm:$0xff]   ;;  %v703_v8 = vunpack.c.l.bf16 %v985_v2  ;;  %v704_v9 = vunpack.c.h.bf16 %v985_v2  ;;  %v988_v18 = vld [vmem:[%s1101_s18 + $0x20] sm:$0xff]   ;;  %v989_v31 = vld [vmem:[%s1101_s18 + $0x28] sm:$0xff]  }
  0x10   : > { %v707_v10 = vunpack.c.l.bf16 %v986_v3  ;;  %v708_v11 = vunpack.c.h.bf16 %v986_v3  ;;  %v711_v12 = vunpack.c.l.bf16 %v987_v6  ;;  %v712_v13 = vunpack.c.h.bf16 %v987_v6  ;;  %v990_v32 = vld [vmem:[%s1101_s18 + $0x30] sm:$0xff]   ;;  %v1137_v33 = vld [vmem:[%s1101_s18 + $0x38] sm:$0xff]   ;;  %v1147_v38 = vld [vmem:[%s1101_s18 + $0x40] sm:$0xff]  }
  0x11   : > { %v306_v14 = vmul.f32 %v1106_v0, %v699_v4  ;;  %v307_v15 = vmul.f32 %v1106_v0, %v700_v5  ;;  %v308_v16 = vmul.f32 %v1106_v0, %v703_v8  ;;  %v309_v17 = vmul.f32 %v1106_v0, %v704_v9  ;;  %v1150_v39 = vld [vmem:[%s1101_s18 + $0x48] sm:$0xff]   ;;  %v1153_v40 = vld [vmem:[%s1101_s18 + $0x50] sm:$0xff]   ;;  %v1156_v41 = vld [vmem:[%s1101_s18 + $0x58] sm:$0xff]  }
  0x12   : > { %v310_v19 = vmul.f32 %v1106_v0, %v707_v10  ;;  %v311_v20 = vmul.f32 %v1106_v0, %v708_v11  ;;  %v312_v21 = vmul.f32 %v1106_v0, %v711_v12  ;;  %v313_v22 = vmul.f32 %v1106_v0, %v712_v13  ;;  %v1159_v42 = vld [vmem:[%s1101_s18 + $0x60] sm:$0xff]   ;;  %v1162_v43 = vld [vmem:[%s1101_s18 + $0x68] sm:$0xff]   ;;  %v1165_v44 = vld [vmem:[%s1101_s18 + $0x70] sm:$0xff]  }
  0x13   : > { %v374_v23 = vadd.f32 %v1115_v7, %v306_v14  ;;  %v375_v24 = vadd.f32 %v1115_v7, %v307_v15  ;;  %v376_v25 = vadd.f32 %v1115_v7, %v308_v16  ;;  %v377_v26 = vadd.f32 %v1115_v7, %v309_v17  ;;  %v1168_v45 = vld [vmem:[%s1101_s18 + $0x78] sm:$0xff]   ;;  %v1171_v46 = vld [vmem:[%s1101_s18 + $0x80] sm:$0xff]   ;;  %v1174_v47 = vld [vmem:[%s1101_s18 + $0x88] sm:$0xff]  }
  0x14   : > { %v378_v27 = vadd.f32 %v1115_v7, %v310_v19  ;;  %v379_v28 = vadd.f32 %v1115_v7, %v311_v20  ;;  %v380_v29 = vadd.f32 %v1115_v7, %v312_v21  ;;  %v381_v30 = vadd.f32 %v1115_v7, %v313_v22  ;;  %v1177_v48 = vld [vmem:[%s1101_s18 + $0x90] sm:$0xff]   ;;  %v1180_v49 = vld [vmem:[%s1101_s18 + $0x98] sm:$0xff]   ;;  %v1183_v50 = vld [vmem:[%s1101_s18 + $0xa0] sm:$0xff]  }
  0x15   : > { %v438_v34 = vmax.f32 %v374_v23, 0.0  ;;  %v439_v35 = vmax.f32 %v375_v24, 0.0  ;;  %v440_v36 = vmax.f32 %v376_v25, 0.0  ;;  %v715_v37 = vunpack.c.l.bf16 %v988_v18  ;;  %v1186_v51 = vld [vmem:[%s1101_s18 + $0xa8] sm:$0xff]   ;;  %v1189_v52 = vld [vmem:[%s1101_s18 + $0xb0] sm:$0xff]   ;;  %v1192_v53 = vld [vmem:[%s1101_s18 + $0xb8] sm:$0xff]  }
  0x16   : > { %v1195_v54 = vld [vmem:[%s1101_s18 + $0xc0] sm:$0xff]   ;;  %v1198_v55 = vld [vmem:[%s1101_s18 + $0xc8] sm:$0xff]   ;;  %v441_v56 = vmax.f32 %v377_v26, 0.0  ;;  %v442_v57 = vmax.f32 %v378_v27, 0.0  ;;  %v443_v58 = vmax.f32 %v379_v28, 0.0  ;;  %v716_v59 = vunpack.c.h.bf16 %v988_v18  ;;  %v1201_v60 = vld [vmem:[%s1101_s18 + $0xd0] sm:$0xff]  }
  0x17   : > { %v1204_v61 = vld [vmem:[%s1101_s18 + $0xd8] sm:$0xff]   ;;  %v1207_v62 = vld [vmem:[%s1101_s18 + $0xe0] sm:$0xff]   ;;  %v828_v63 = vpack.c.bf16 %v439_v35, %v438_v34  ;;  %v444_v1 = vmax.f32 %v380_v29, 0.0  ;;  %v445_v2 = vmax.f32 %v381_v30, 0.0  ;;  %v314_v3 = vmul.f32 %v1106_v0, %v715_v37  ;;  %v1211_v4 = vld [vmem:[%s1101_s18 + $0xe8] sm:$0xff]  }
  0x18   : > { %v1214_v5 = vld [vmem:[%s1101_s18 + $0xf0] sm:$0xff]   ;;  %v1217_v6 = vld [vmem:[%s1101_s18 + $0xf8] sm:$0xff]   ;;  %v833_v8 = vpack.c.bf16 %v441_v56, %v440_v36  ;;  %v838_v9 = vpack.c.bf16 %v443_v58, %v442_v57  ;;  %v315_v10 = vmul.f32 %v1106_v0, %v716_v59  ;;  %v719_v11 = vunpack.c.l.bf16 %v989_v31 }
  0x19   : > { %829 = vst [vmem:[%s1144_s25] sm:$0xff] %v828_v63   ;;  %v843_v12 = vpack.c.bf16 %v445_v2, %v444_v1  ;;  %v382_v13 = vadd.f32 %v1115_v7, %v314_v3  ;;  %v720_v14 = vunpack.c.h.bf16 %v989_v31  ;;  %v723_v15 = vunpack.c.l.bf16 %v990_v32 }
  0x1a   : > { %1016 = vst [vmem:[%s1144_s25 + $0x8] sm:$0xff] %v833_v8   ;;  %v383_v16 = vadd.f32 %v1115_v7, %v315_v10  ;;  %v316_v17 = vmul.f32 %v1106_v0, %v719_v11  ;;  %v724_v18 = vunpack.c.h.bf16 %v990_v32  ;;  %v727_v19 = vunpack.c.l.bf16 %v1137_v33 }
  0x1b   : > { %1017 = vst [vmem:[%s1144_s25 + $0x10] sm:$0xff] %v838_v9   ;;  %v446_v20 = vmax.f32 %v382_v13, 0.0  ;;  %v317_v21 = vmul.f32 %v1106_v0, %v720_v14  ;;  %v318_v22 = vmul.f32 %v1106_v0, %v723_v15  ;;  %v728_v23 = vunpack.c.h.bf16 %v1137_v33 }
  0x1c   : > { %1018 = vst [vmem:[%s1144_s25 + $0x18] sm:$0xff] %v843_v12   ;;  %v447_v24 = vmax.f32 %v383_v16, 0.0  ;;  %v384_v25 = vadd.f32 %v1115_v7, %v316_v17  ;;  %v319_v26 = vmul.f32 %v1106_v0, %v724_v18  ;;  %v320_v27 = vmul.f32 %v1106_v0, %v727_v19 }
  0x1d   : > { %v385_v28 = vadd.f32 %v1115_v7, %v317_v21  ;;  %v386_v29 = vadd.f32 %v1115_v7, %v318_v22  ;;  %v321_v30 = vmul.f32 %v1106_v0, %v728_v23  ;;  %v731_v31 = vunpack.c.l.bf16 %v1147_v38 }
  0x1e   : > { %v848_v32 = vpack.c.bf16 %v447_v24, %v446_v20  ;;  %v448_v34 = vmax.f32 %v384_v25, 0.0  ;;  %v387_v33 = vadd.f32 %v1115_v7, %v319_v26  ;;  %v388_v35 = vadd.f32 %v1115_v7, %v320_v27 }
  0x1f   : > { %v449_v36 = vmax.f32 %v385_v28, 0.0  ;;  %v450_v37 = vmax.f32 %v386_v29, 0.0  ;;  %v389_v56 = vadd.f32 %v1115_v7, %v321_v30  ;;  %v732_v57 = vunpack.c.h.bf16 %v1147_v38 }
  0x20   : > { %1019 = vst [vmem:[%s1144_s25 + $0x20] sm:$0xff] %v848_v32   ;;  %v451_v58 = vmax.f32 %v387_v33, 0.0  ;;  %v452_v59 = vmax.f32 %v388_v35, 0.0  ;;  %v322_v63 = vmul.f32 %v1106_v0, %v731_v31  ;;  %v735_v1 = vunpack.c.l.bf16 %v1150_v39 }
  0x21   : > { %v853_v2 = vpack.c.bf16 %v449_v36, %v448_v34  ;;  %v453_v3 = vmax.f32 %v389_v56, 0.0  ;;  %v323_v8 = vmul.f32 %v1106_v0, %v732_v57  ;;  %v736_v9 = vunpack.c.h.bf16 %v1150_v39 }
  0x22   : > { %v858_v10 = vpack.c.bf16 %v451_v58, %v450_v37  ;;  %v390_v11 = vadd.f32 %v1115_v7, %v322_v63  ;;  %v324_v38 = vmul.f32 %v1106_v0, %v735_v1  ;;  %v739_v12 = vunpack.c.l.bf16 %v1153_v40 }
  0x23   : > { %1020 = vst [vmem:[%s1144_s25 + $0x28] sm:$0xff] %v853_v2   ;;  %v863_v13 = vpack.c.bf16 %v453_v3, %v452_v59  ;;  %v391_v14 = vadd.f32 %v1115_v7, %v323_v8  ;;  %v325_v15 = vmul.f32 %v1106_v0, %v736_v9  ;;  %v740_v16 = vunpack.c.h.bf16 %v1153_v40 }
  0x24   : > { %1021 = vst [vmem:[%s1144_s25 + $0x30] sm:$0xff] %v858_v10   ;;  %v454_v17 = vmax.f32 %v390_v11, 0.0  ;;  %v392_v18 = vadd.f32 %v1115_v7, %v324_v38  ;;  %v326_v39 = vmul.f32 %v1106_v0, %v739_v12  ;;  %v743_v19 = vunpack.c.l.bf16 %v1156_v41 }
  0x25   : > { %1022 = vst [vmem:[%s1144_s25 + $0x38] sm:$0xff] %v863_v13   ;;  %v455_v20 = vmax.f32 %v391_v14, 0.0  ;;  %v393_v21 = vadd.f32 %v1115_v7, %v325_v15  ;;  %v327_v22 = vmul.f32 %v1106_v0, %v740_v16  ;;  %v744_v23 = vunpack.c.h.bf16 %v1156_v41 }
  0x26   : > { %v456_v24 = vmax.f32 %v392_v18, 0.0  ;;  %v394_v40 = vadd.f32 %v1115_v7, %v326_v39  ;;  %v328_v25 = vmul.f32 %v1106_v0, %v743_v19  ;;  %v747_v26 = vunpack.c.l.bf16 %v1159_v42 }
  0x27   : > { %v868_v27 = vpack.c.bf16 %v455_v20, %v454_v17  ;;  %v457_v28 = vmax.f32 %v393_v21, 0.0  ;;  %v395_v29 = vadd.f32 %v1115_v7, %v327_v22  ;;  %v329_v30 = vmul.f32 %v1106_v0, %v744_v23 }
  0x28   : > { %v458_v31 = vmax.f32 %v394_v40, 0.0  ;;  %v396_v32 = vadd.f32 %v1115_v7, %v328_v25  ;;  %v748_v34 = vunpack.c.h.bf16 %v1159_v42  ;;  %v330_v41 = vmul.f32 %v1106_v0, %v747_v26 }
  0x29   : > { %1023 = vst [vmem:[%s1144_s25 + $0x40] sm:$0xff] %v868_v27   ;;  %v873_v33 = vpack.c.bf16 %v457_v28, %v456_v24  ;;  %v459_v35 = vmax.f32 %v395_v29, 0.0  ;;  %v397_v36 = vadd.f32 %v1115_v7, %v329_v30  ;;  %v751_v37 = vunpack.c.l.bf16 %v1162_v43 }
  0x2a   : > { %v460_v56 = vmax.f32 %v396_v32, 0.0  ;;  %v331_v57 = vmul.f32 %v1106_v0, %v748_v34  ;;  %v398_v58 = vadd.f32 %v1115_v7, %v330_v41  ;;  %v752_v59 = vunpack.c.h.bf16 %v1162_v43 }
  0x2b   : > { %1024 = vst [vmem:[%s1144_s25 + $0x48] sm:$0xff] %v873_v33   ;;  %v878_v63 = vpack.c.bf16 %v459_v35, %v458_v31  ;;  %v461_v42 = vmax.f32 %v397_v36, 0.0  ;;  %v332_v1 = vmul.f32 %v1106_v0, %v751_v37  ;;  %v755_v2 = vunpack.c.l.bf16 %v1165_v44 }
  0x2c   : > { %v399_v3 = vadd.f32 %v1115_v7, %v331_v57  ;;  %v462_v8 = vmax.f32 %v398_v58, 0.0  ;;  %v333_v9 = vmul.f32 %v1106_v0, %v752_v59  ;;  %v756_v10 = vunpack.c.h.bf16 %v1165_v44 }
  0x2d   : > { %1025 = vst [vmem:[%s1144_s25 + $0x50] sm:$0xff] %v878_v63   ;;  %v883_v11 = vpack.c.bf16 %v461_v42, %v460_v56  ;;  %v400_v38 = vadd.f32 %v1115_v7, %v332_v1  ;;  %v334_v43 = vmul.f32 %v1106_v0, %v755_v2  ;;  %v759_v12 = vunpack.c.l.bf16 %v1168_v45 }
  0x2e   : > { %v463_v13 = vmax.f32 %v399_v3, 0.0  ;;  %v401_v14 = vadd.f32 %v1115_v7, %v333_v9  ;;  %v335_v15 = vmul.f32 %v1106_v0, %v756_v10  ;;  %v760_v16 = vunpack.c.h.bf16 %v1168_v45 }
  0x2f   : > { %1026 = vst [vmem:[%s1144_s25 + $0x58] sm:$0xff] %v883_v11   ;;  %v464_v17 = vmax.f32 %v400_v38, 0.0  ;;  %v402_v44 = vadd.f32 %v1115_v7, %v334_v43  ;;  %v336_v18 = vmul.f32 %v1106_v0, %v759_v12  ;;  %v763_v39 = vunpack.c.l.bf16 %v1171_v46 }
  0x30   : > { %v888_v19 = vpack.c.bf16 %v463_v13, %v462_v8  ;;  %v465_v20 = vmax.f32 %v401_v14, 0.0  ;;  %v403_v21 = vadd.f32 %v1115_v7, %v335_v15  ;;  %v337_v22 = vmul.f32 %v1106_v0, %v760_v16 }
  0x31   : > { %v466_v23 = vmax.f32 %v402_v44, 0.0  ;;  %v404_v24 = vadd.f32 %v1115_v7, %v336_v18  ;;  %v764_v45 = vunpack.c.h.bf16 %v1171_v46  ;;  %v338_v40 = vmul.f32 %v1106_v0, %v763_v39 }
  0x32   : > { %1027 = vst [vmem:[%s1144_s25 + $0x60] sm:$0xff] %v888_v19   ;;  %v893_v25 = vpack.c.bf16 %v465_v20, %v464_v17  ;;  %v467_v26 = vmax.f32 %v403_v21, 0.0  ;;  %v405_v27 = vadd.f32 %v1115_v7, %v337_v22  ;;  %v767_v28 = vunpack.c.l.bf16 %v1174_v47 }
  0x33   : > { %v468_v29 = vmax.f32 %v404_v24, 0.0  ;;  %v339_v30 = vmul.f32 %v1106_v0, %v764_v45  ;;  %v406_v31 = vadd.f32 %v1115_v7, %v338_v40  ;;  %v768_v32 = vunpack.c.h.bf16 %v1174_v47 }
  0x34   : > { %1028 = vst [vmem:[%s1144_s25 + $0x68] sm:$0xff] %v893_v25   ;;  %v898_v34 = vpack.c.bf16 %v467_v26, %v466_v23  ;;  %v469_v46 = vmax.f32 %v405_v27, 0.0  ;;  %v340_v41 = vmul.f32 %v1106_v0, %v767_v28  ;;  %v771_v33 = vunpack.c.l.bf16 %v1177_v48 }
  0x35   : > { %v407_v35 = vadd.f32 %v1115_v7, %v339_v30  ;;  %v470_v36 = vmax.f32 %v406_v31, 0.0  ;;  %v341_v37 = vmul.f32 %v1106_v0, %v768_v32  ;;  %v772_v56 = vunpack.c.h.bf16 %v1177_v48 }
  0x36   : > { %1029 = vst [vmem:[%s1144_s25 + $0x70] sm:$0xff] %v898_v34   ;;  %v903_v57 = vpack.c.bf16 %v469_v46, %v468_v29  ;;  %v408_v58 = vadd.f32 %v1115_v7, %v340_v41  ;;  %v342_v47 = vmul.f32 %v1106_v0, %v771_v33  ;;  %v775_v59 = vunpack.c.l.bf16 %v1180_v49 }
  0x37   : > { %v471_v63 = vmax.f32 %v407_v35, 0.0  ;;  %v409_v42 = vadd.f32 %v1115_v7, %v341_v37  ;;  %v343_v1 = vmul.f32 %v1106_v0, %v772_v56  ;;  %v776_v2 = vunpack.c.h.bf16 %v1180_v49 }
  0x38   : > { %1030 = vst [vmem:[%s1144_s25 + $0x78] sm:$0xff] %v903_v57   ;;  %v472_v3 = vmax.f32 %v408_v58, 0.0  ;;  %v410_v48 = vadd.f32 %v1115_v7, %v342_v47  ;;  %v344_v8 = vmul.f32 %v1106_v0, %v775_v59  ;;  %v779_v9 = vunpack.c.l.bf16 %v1183_v50 }
  0x39   : > { %v908_v10 = vpack.c.bf16 %v471_v63, %v470_v36  ;;  %v473_v11 = vmax.f32 %v409_v42, 0.0  ;;  %v411_v38 = vadd.f32 %v1115_v7, %v343_v1  ;;  %v345_v43 = vmul.f32 %v1106_v0, %v776_v2 }
  0x3a   : > { %v474_v12 = vmax.f32 %v410_v48, 0.0  ;;  %v412_v13 = vadd.f32 %v1115_v7, %v344_v8  ;;  %v780_v49 = vunpack.c.h.bf16 %v1183_v50  ;;  %v346_v14 = vmul.f32 %v1106_v0, %v779_v9 }
  0x3b   : > { %1031 = vst [vmem:[%s1144_s25 + $0x80] sm:$0xff] %v908_v10   ;;  %v913_v15 = vpack.c.bf16 %v473_v11, %v472_v3  ;;  %v475_v16 = vmax.f32 %v411_v38, 0.0  ;;  %v413_v17 = vadd.f32 %v1115_v7, %v345_v43  ;;  %v783_v44 = vunpack.c.l.bf16 %v1186_v51 }
  0x3c   : > { %v476_v18 = vmax.f32 %v412_v13, 0.0  ;;  %v347_v39 = vmul.f32 %v1106_v0, %v780_v49  ;;  %v414_v19 = vadd.f32 %v1115_v7, %v346_v14  ;;  %v784_v20 = vunpack.c.h.bf16 %v1186_v51 }
  0x3d   : > { %1032 = vst [vmem:[%s1144_s25 + $0x88] sm:$0xff] %v913_v15   ;;  %v918_v21 = vpack.c.bf16 %v475_v16, %v474_v12  ;;  %v477_v50 = vmax.f32 %v413_v17, 0.0  ;;  %v348_v22 = vmul.f32 %v1106_v0, %v783_v44  ;;  %v787_v23 = vunpack.c.l.bf16 %v1189_v52 }
  0x3e   : > { %v415_v24 = vadd.f32 %v1115_v7, %v347_v39  ;;  %v478_v45 = vmax.f32 %v414_v19, 0.0  ;;  %v349_v40 = vmul.f32 %v1106_v0, %v784_v20  ;;  %v788_v25 = vunpack.c.h.bf16 %v1189_v52 }
  0x3f   : > { %1033 = vst [vmem:[%s1144_s25 + $0x90] sm:$0xff] %v918_v21   ;;  %v923_v26 = vpack.c.bf16 %v477_v50, %v476_v18  ;;  %v416_v27 = vadd.f32 %v1115_v7, %v348_v22  ;;  %v350_v51 = vmul.f32 %v1106_v0, %v787_v23  ;;  %v791_v28 = vunpack.c.l.bf16 %v1192_v53 }
  0x40   : > { %v479_v29 = vmax.f32 %v415_v24, 0.0  ;;  %v417_v30 = vadd.f32 %v1115_v7, %v349_v40  ;;  %v351_v31 = vmul.f32 %v1106_v0, %v788_v25  ;;  %v792_v32 = vunpack.c.h.bf16 %v1192_v53 }
  0x41   : > { %1034 = vst [vmem:[%s1144_s25 + $0x98] sm:$0xff] %v923_v26   ;;  %v480_v34 = vmax.f32 %v416_v27, 0.0  ;;  %v418_v52 = vadd.f32 %v1115_v7, %v350_v51  ;;  %v352_v46 = vmul.f32 %v1106_v0, %v791_v28  ;;  %v795_v41 = vunpack.c.l.bf16 %v1195_v54 }
  0x42   : > { %v928_v33 = vpack.c.bf16 %v479_v29, %v478_v45  ;;  %v481_v35 = vmax.f32 %v417_v30, 0.0  ;;  %v419_v36 = vadd.f32 %v1115_v7, %v351_v31  ;;  %v353_v37 = vmul.f32 %v1106_v0, %v792_v32 }
  0x43   : > { %v482_v56 = vmax.f32 %v418_v52, 0.0  ;;  %v420_v57 = vadd.f32 %v1115_v7, %v352_v46  ;;  %v796_v53 = vunpack.c.h.bf16 %v1195_v54  ;;  %v354_v58 = vmul.f32 %v1106_v0, %v795_v41 }
  0x44   : > { %1035 = vst [vmem:[%s1144_s25 + $0xa0] sm:$0xff] %v928_v33   ;;  %v933_v47 = vpack.c.bf16 %v481_v35, %v480_v34  ;;  %v483_v59 = vmax.f32 %v419_v36, 0.0  ;;  %v421_v63 = vadd.f32 %v1115_v7, %v353_v37  ;;  %v799_v42 = vunpack.c.l.bf16 %v1198_v55 }
  0x45   : > { %v484_v1 = vmax.f32 %v420_v57, 0.0  ;;  %v355_v2 = vmul.f32 %v1106_v0, %v796_v53  ;;  %v422_v3 = vadd.f32 %v1115_v7, %v354_v58  ;;  %v800_v48 = vunpack.c.h.bf16 %v1198_v55 }
  0x46   : > { %1036 = vst [vmem:[%s1144_s25 + $0xa8] sm:$0xff] %v933_v47   ;;  %v938_v8 = vpack.c.bf16 %v483_v59, %v482_v56  ;;  %v485_v54 = vmax.f32 %v421_v63, 0.0  ;;  %v356_v9 = vmul.f32 %v1106_v0, %v799_v42  ;;  %v803_v10 = vunpack.c.l.bf16 %v1201_v60 }
  0x47   : > { %v423_v11 = vadd.f32 %v1115_v7, %v355_v2  ;;  %v486_v38 = vmax.f32 %v422_v3, 0.0  ;;  %v357_v43 = vmul.f32 %v1106_v0, %v800_v48  ;;  %v804_v12 = vunpack.c.h.bf16 %v1201_v60 }
  0x48   : > { %1037 = vst [vmem:[%s1144_s25 + $0xb0] sm:$0xff] %v938_v8   ;;  %v943_v13 = vpack.c.bf16 %v485_v54, %v484_v1  ;;  %v424_v49 = vadd.f32 %v1115_v7, %v356_v9  ;;  %v358_v55 = vmul.f32 %v1106_v0, %v803_v10  ;;  %v807_v14 = vunpack.c.l.bf16 %v1204_v61 }
  0x49   : > { %v487_v15 = vmax.f32 %v423_v11, 0.0  ;;  %v425_v16 = vadd.f32 %v1115_v7, %v357_v43  ;;  %v359_v17 = vmul.f32 %v1106_v0, %v804_v12  ;;  %v808_v44 = vunpack.c.h.bf16 %v1204_v61 }
  0x4a   : > { %1038 = vst [vmem:[%s1144_s25 + $0xb8] sm:$0xff] %v943_v13   ;;  %v488_v18 = vmax.f32 %v424_v49, 0.0  ;;  %v426_v60 = vadd.f32 %v1115_v7, %v358_v55  ;;  %v360_v39 = vmul.f32 %v1106_v0, %v807_v14  ;;  %v811_v19 = vunpack.c.l.bf16 %v1207_v62 }
  0x4b   : > { %v948_v20 = vpack.c.bf16 %v487_v15, %v486_v38  ;;  %v489_v21 = vmax.f32 %v425_v16, 0.0  ;;  %v427_v50 = vadd.f32 %v1115_v7, %v359_v17  ;;  %v361_v22 = vmul.f32 %v1106_v0, %v808_v44 }
  0x4c   : > { %v490_v23 = vmax.f32 %v426_v60, 0.0  ;;  %v428_v24 = vadd.f32 %v1115_v7, %v360_v39  ;;  %v812_v61 = vunpack.c.h.bf16 %v1207_v62  ;;  %v362_v45 = vmul.f32 %v1106_v0, %v811_v19 }
  0x4d   : > { %1039 = vst [vmem:[%s1144_s25 + $0xc0] sm:$0xff] %v948_v20   ;;  %v953_v40 = vpack.c.bf16 %v489_v21, %v488_v18  ;;  %v491_v25 = vmax.f32 %v427_v50, 0.0  ;;  %v429_v26 = vadd.f32 %v1115_v7, %v361_v22  ;;  %v815_v27 = vunpack.c.l.bf16 %v1211_v4 }
  0x4e   : > { %v492_v51 = vmax.f32 %v428_v24, 0.0  ;;  %v363_v28 = vmul.f32 %v1106_v0, %v812_v61  ;;  %v430_v29 = vadd.f32 %v1115_v7, %v362_v45  ;;  %v816_v30 = vunpack.c.h.bf16 %v1211_v4 }
  0x4f   : > { %1040 = vst [vmem:[%s1144_s25 + $0xc8] sm:$0xff] %v953_v40   ;;  %v958_v31 = vpack.c.bf16 %v491_v25, %v490_v23  ;;  %v493_v62 = vmax.f32 %v429_v26, 0.0  ;;  %v364_v32 = vmul.f32 %v1106_v0, %v815_v27  ;;  %v819_v34 = vunpack.c.l.bf16 %v1214_v5 }
  0x50   : > { %v431_v52 = vadd.f32 %v1115_v7, %v363_v28  ;;  %v494_v46 = vmax.f32 %v430_v29, 0.0  ;;  %v365_v41 = vmul.f32 %v1106_v0, %v816_v30  ;;  %v820_v33 = vunpack.c.h.bf16 %v1214_v5 }
  0x51   : > { %1041 = vst [vmem:[%s1144_s25 + $0xd0] sm:$0xff] %v958_v31   ;;  %v963_v35 = vpack.c.bf16 %v493_v62, %v492_v51  ;;  %v432_v36 = vadd.f32 %v1115_v7, %v364_v32  ;;  %v366_v4 = vmul.f32 %v1106_v0, %v819_v34  ;;  %v823_v37 = vunpack.c.l.bf16 %v1217_v6 }
  0x52   : > { %v495_v56 = vmax.f32 %v431_v52, 0.0  ;;  %v433_v57 = vadd.f32 %v1115_v7, %v365_v41  ;;  %v367_v53 = vmul.f32 %v1106_v0, %v820_v33  ;;  %v824_v58 = vunpack.c.h.bf16 %v1217_v6 }
  0x53   : > { %1042 = vst [vmem:[%s1144_s25 + $0xd8] sm:$0xff] %v963_v35   ;;  %v496_v47 = vmax.f32 %v432_v36, 0.0  ;;  %v434_v5 = vadd.f32 %v1115_v7, %v366_v4  ;;  %v368_v59 = vmul.f32 %v1106_v0, %v823_v37 }
  0x54   : > { %v968_v63 = vpack.c.bf16 %v495_v56, %v494_v46  ;;  %v497_v42 = vmax.f32 %v433_v57, 0.0  ;;  %v435_v1 = vadd.f32 %v1115_v7, %v367_v53  ;;  %v369_v2 = vmul.f32 %v1106_v0, %v824_v58 }
  0x55   : > { %v498_v3 = vmax.f32 %v434_v5, 0.0  ;;  %v436_v48 = vadd.f32 %v1115_v7, %v368_v59 }
  0x56   : > { %1043 = vst [vmem:[%s1144_s25 + $0xe0] sm:$0xff] %v968_v63   ;;  %v973_v6 = vpack.c.bf16 %v497_v42, %v496_v47  ;;  %v499_v8 = vmax.f32 %v435_v1, 0.0  ;;  %v437_v54 = vadd.f32 %v1115_v7, %v369_v2 }
  0x57   : > { %v500_v9 = vmax.f32 %v436_v48, 0.0 }
  0x58   : > { %1044 = vst [vmem:[%s1144_s25 + $0xe8] sm:$0xff] %v973_v6   ;;  %v978_v10 = vpack.c.bf16 %v499_v8, %v498_v3  ;;  %v501_v11 = vmax.f32 %v437_v54, 0.0 }
  0x5a   : > { %1045 = vst [vmem:[%s1144_s25 + $0xf0] sm:$0xff] %v978_v10   ;;  %v983_v38 = vpack.c.bf16 %v501_v11, %v500_v9 }
  0x5c   : > { %1046 = vst [vmem:[%s1144_s25 + $0xf8] sm:$0xff] %v983_v38  }
  0x5d PF: > { %s13_s12 = sadd.s32 1, %s1063_s12  }
  0x5e   : > { %p10_p4 = scmp.ge.s32.totalorder %s13_s12, 4  }
  0x60   :  { %12 = sbr.rel (!%p10_p4) target bundleno = 1 (0x1), region = 62 }

</bundles_post_ra>
